<compile_context>
chip_gen: v6e
topology: v6e:2x2x1
jax: 0.10.0
libtpu: 0.0.40
codegen_flags: <defaults>
</compile_context>

<pallas_src>
import functools
import math

import jax
import jax.numpy as jnp
from jax.experimental import pallas as pl
from jax.experimental.pallas import tpu as pltpu


# ----------------------------------------------------------------------------
# Tree construction (host-side Python glue, mirrors the torch module's __init__)
# ----------------------------------------------------------------------------
class _Node:
    def __init__(self, data):
        self.data = data
        self.left = self.right = None


def _insert_level_order(data, i, n):
    if i < n:
        root = _Node(data[i])
        root.left = _insert_level_order(data, 2 * i + 1, n)
        root.right = _insert_level_order(data, 2 * i + 2, n)
        return root
    return None


def _has_path(root, arr, x):
    if not root:
        return False
    arr.append(root.data)
    if root.data == x:
        return True
    if _has_path(root.left, arr, x) or _has_path(root.right, arr, x):
        return True
    arr.pop(-1)
    return False


def _path(root, x):
    arr = []
    if _has_path(root, arr, x):
        return arr
    return None


def _gen_node(k):
    num = math.ceil(math.log2(k) + 1)
    n = 2 ** (num - 1) - 1 + k
    return list(range(n))


def build_label_vector_table(num_label, key):
    """Returns [num_label, num_label] table: row c = label_vector[c]."""
    data = _gen_node(num_label)
    n = len(data)
    label = data[-num_label:]
    root = _insert_level_order(data, 0, n)

    # Deterministic "parameters": one N(0,1) vector per non-root node.
    vec = jax.random.normal(key, (n - 1, num_label), dtype=jnp.float32)

    # Indicator mask built host-side (single device op, no per-element .at[].set).
    mask_rows = []
    for leaf in label:
        p = _path(root, leaf)
        on_path = set(node for node in p if node != root.data)
        mask_rows.append([1.0 if (i + 1) in on_path else 0.0 for i in range(n - 1)])
    mask = jnp.asarray(mask_rows, dtype=jnp.float32)      # [num_label, n-1]

    return mask @ vec  # [num_label, num_label]


# ----------------------------------------------------------------------------
# Pallas kernel: one-hot MXU bias gather + cross-entropy partial sum per tile
# ----------------------------------------------------------------------------
def _round_up(x, m):
    return ((x + m - 1) // m) * m


def _cdiv(a, b):
    return -(-a // b)


def _covertree_loss_kernel(logits_ref,   # VMEM [tb, C] f32   (last tile may be ragged)
                           labels_ref,   # VMEM [tb, 1] int32
                           table_ref,    # VMEM [C, C]  f32   (resident bias table)
                           out_ref,      # VMEM [1, 8, 128] f32 (per-tile partial)
                           *, tb, b_orig):
    tile = pl.program_id(0)
    base = tile * tb

    logits = logits_ref[...]                                  # [tb, C] f32
    labels = labels_ref[...]                                  # [tb, 1] i32

    # One-hot "gather" of bias rows on the MXU (replaces the serial per-row copy loop).
    col = jax.lax.broadcasted_iota(jnp.int32, logits.shape, 1)
    hit = col == labels                                       # [tb, C] bool
    one_hot = hit.astype(jnp.float32)

    # f32 x f32 with HIGHEST precision: one-hot selection of f32 rows stays exact
    # (bf16-truncating the table would break the 1e-5 accuracy target).
    bias = jnp.dot(one_hot, table_ref[...],
                   preferred_element_type=jnp.float32,
                   precision=jax.lax.Precision.HIGHEST)
    z = logits + bias                                         # [tb, C] f32

    # Row-wise log-sum-exp (EUP exp/log, XLU reductions).
    m = jnp.max(z, axis=-1, keepdims=True)
    sumexp = jnp.sum(jnp.exp(z - m), axis=-1, keepdims=True)
    lse = m + jnp.log(sumexp)                                 # [tb, 1]

    # picked[i] = z[i, labels[i]] — reuse the one-hot compare; where-select so
    # garbage in ragged rows can never propagate NaN via 0*inf.
    picked = jnp.sum(jnp.where(hit, z, 0.0), axis=-1, keepdims=True)

    # Mask ragged (out-of-range) batch rows with a select; per-tile partial sum.
    rows = base + jax.lax.broadcasted_iota(jnp.int32, (tb, 1), 0)
    valid = rows < b_orig
    partial = jnp.sum(jnp.where(valid, lse - picked, 0.0))

    # Lane-dense (1, 8, 128) output block.
    out_ref[...] = jnp.full(out_ref.shape, partial, dtype=jnp.float32)


def covertree_loss(logits, labels, table, *, tb=None):
    """mean_i [ logsumexp(logits[i] + table[labels[i]]) - (logits[i] + table[labels[i]])[labels[i]] ]"""
    b, c = logits.shape
    assert table.shape == (c, c)

    logits = logits.astype(jnp.float32)
    table = table.astype(jnp.float32)          # keep f32 end-to-end (v5e has no bf16 VPU/EUP)
    labels_col = labels.astype(jnp.int32).reshape(b, 1)

    # ---- per-generation VMEM budget (v7x: 64 MiB/TC, v5e/v6e: 128 MiB) ----
    try:
        vmem_cap = int(pltpu.get_tpu_info().vmem_capacity_bytes)
    except Exception:
        vmem_cap = 0
    if vmem_cap < (16 << 20):
        vmem_cap = 64 << 20                    # v7x per-TC size = safe lower bound
    budget = (vmem_cap * 3) // 4               # leave headroom for compiler scratch

    # VMEM layout footprints (lane dim pads to 128, sublane dim to 8).
    c_lane = max(_round_up(c, 128), 128)
    c_sub = max(_round_up(c, 8), 8)
    single_buffer_table = c >= 1024            # only bother once the table is MiB-scale
    table_bytes = (1 if single_buffer_table else 2) * c_sub * c_lane * 4
    # TODO(synk): for c_lane >= 4096 the resident C x C table no longer fits v7x VMEM;
    # switch to an HBM (pl.ANY) table + scalar-prefetch-driven DMA row gather.

    if tb is None:
        row_bytes = c_lane * 4                                   # one logits/bias/z row
        lab_row_bytes = 128 * 4                                  # (tb,1) i32 pads to 128 lanes
        avail = max(budget - table_bytes - (2 << 20), 4 << 20)
        # Live tile-sized buffers: 2x pipelined logits + 2x labels + ~4 f32 temporaries.
        tb = avail // (6 * row_bytes + 2 * lab_row_bytes)
        tb = min(tb, max((4 << 20) // row_bytes, 8))             # ~4 MiB logits block is plenty
        tb = max((tb // 8) * 8, 8)

    tb = int(tb)
    if tb >= b:
        tb = b                        # one full-extent block (legal for any b)
    else:
        tb = max((tb // 8) * 8, 8)    # sublane-aligned tile; last tile may be ragged

    num_tiles = _cdiv(b, tb)
    # v7x has 2 TensorCores: avoid one giant tile / odd tile counts when tiles are big.
    if num_tiles % 2 == 1 and tb >= 512:
        cand = max(_round_up(_cdiv(b, num_tiles + 1), 8), 8)
        if cand >= 256 and _cdiv(b, cand) % 2 == 0:
            tb, num_tiles = cand, _cdiv(b, cand)

    if single_buffer_table:
        table_spec = pl.BlockSpec((c, c), lambda i: (0, 0), pipeline_mode=pl.Buffered(1))
    else:
        table_spec = pl.BlockSpec((c, c), lambda i: (0, 0))

    kernel = functools.partial(_covertree_loss_kernel, tb=tb, b_orig=b)

    partials = pl.pallas_call(
        kernel,
        out_shape=jax.ShapeDtypeStruct((num_tiles, 8, 128), jnp.float32),
        grid=(num_tiles,),
        in_specs=[
            pl.BlockSpec((tb, c), lambda i: (i, 0)),     # logits tile (unpadded, ragged ok)
            pl.BlockSpec((tb, 1), lambda i: (i, 0)),     # labels column tile
            table_spec,                                  # resident bias table
        ],
        out_specs=pl.BlockSpec((1, 8, 128), lambda i: (i, 0, 0)),
        compiler_params=pltpu.CompilerParams(
            dimension_semantics=("parallel",),
            vmem_limit_bytes=int(budget),
        ),
    )(logits, labels_col, table)

    # Mean over the TRUE batch size (not the per-tile size).
    return jnp.sum(partials[:, 0, 0]) / jnp.float32(b)


# ----------------------------------------------------------------------------
# Reference (plain JAX) for correctness check
# ----------------------------------------------------------------------------
def _ref_loss(logits, labels, table):
    z = logits + table[labels]
    logz = jax.nn.log_softmax(z, axis=-1)
    nll = -jnp.take_along_axis(logz, labels[:, None], axis=-1)[:, 0]
    return jnp.mean(nll)


if __name__ == "__main__":
    # --- small shape matching the module spec ---
    num_label = 8
    batch = 4

    key = jax.random.PRNGKey(0)
    k_vec, k_logits, k_labels = jax.random.split(key, 3)

    table = build_label_vector_table(num_label, k_vec)                        # [C, C]
    logits = jax.random.normal(k_logits, (batch, num_label), jnp.float32)     # [B, C]
    labels = jax.random.randint(k_labels, (batch,), 0, num_label, jnp.int32)  # [B]

    loss = jax.block_until_ready(covertree_loss(logits, labels, table))
    ref = _ref_loss(logits, labels, table)
    assert jnp.allclose(loss, ref, atol=1e-5, rtol=1e-5), (loss, ref)

    # --- multi-tile grid with a ragged last tile (exercises in-kernel masking) ---
    num_label2, batch2 = 64, 300
    k2_vec, k2_logits, k2_labels = jax.random.split(jax.random.PRNGKey(1), 3)
    table2 = build_label_vector_table(num_label2, k2_vec)
    logits2 = jax.random.normal(k2_logits, (batch2, num_label2), jnp.float32)
    labels2 = jax.random.randint(k2_labels, (batch2,), 0, num_label2, jnp.int32)

    loss2 = jax.block_until_ready(covertree_loss(logits2, labels2, table2, tb=128))
    ref2 = _ref_loss(logits2, labels2, table2)
    assert jnp.allclose(loss2, ref2, atol=1e-5, rtol=1e-5), (loss2, ref2)

    print("KERNEL_OK")
</pallas_src>

<mosaic_0001>
module attributes {stable_mosaic.version = 11 : i64} {
  func.func @_covertree_loss_kernel(%arg0: i32, %arg1: memref<4x8xf32, #tpu.memory_space<vmem>>, %arg2: memref<4x1xi32, #tpu.memory_space<vmem>>, %arg3: memref<8x8xf32, #tpu.memory_space<vmem>>, %arg4: memref<1x8x128xf32, #tpu.memory_space<vmem>>) attributes {dimension_semantics = [#tpu.dimension_semantics<parallel>], iteration_bounds = array<i64: 1>, scalar_prefetch = 0 : i64, scratch_operands = 0 : i64, tpu.core_type = #tpu.core_type<tc>, window_params = [{transform_indices = @transform_0, window_bounds = array<i64: 4, 8>}, {transform_indices = @transform_1, window_bounds = array<i64: 4, 1>}, {pipeline_mode = #tpu.pipeline_mode<synchronous>, transform_indices = @transform_2, window_bounds = array<i64: 8, 8>}, {transform_indices = @transform_3, window_bounds = array<i64: 1, 8, 128>}]} {
    %c4_i32 = arith.constant 4 : i32
    %0 = arith.muli %arg0, %c4_i32 : i32
    %c0 = arith.constant 0 : index
    %c0_0 = arith.constant 0 : index
    %1 = vector.load %arg1[%c0, %c0_0] : memref<4x8xf32, #tpu.memory_space<vmem>>, vector<4x8xf32>
    %c0_1 = arith.constant 0 : index
    %c0_2 = arith.constant 0 : index
    %2 = vector.load %arg2[%c0_1, %c0_2] : memref<4x1xi32, #tpu.memory_space<vmem>>, vector<4x1xi32>
    %3 = tpu.iota {dimensions = array<i32: 1>} : vector<4x8xi32>
    %4 = vector.broadcast %2 : vector<4x1xi32> to vector<4x8xi32>
    %5 = arith.cmpi eq, %3, %4 : vector<4x8xi32>
    %6 = arith.extui %5 : vector<4x8xi1> to vector<4x8xi32>
    %7 = arith.sitofp %6 : vector<4x8xi32> to vector<4x8xf32>
    %c0_3 = arith.constant 0 : index
    %c0_4 = arith.constant 0 : index
    %8 = vector.load %arg3[%c0_3, %c0_4] : memref<8x8xf32, #tpu.memory_space<vmem>>, vector<8x8xf32>
    %cst = arith.constant dense<0.000000e+00> : vector<4x8xf32>
    %9 = tpu.matmul %7, %8, %cst {dimension_numbers = #tpu.dot_dimension_numbers<[1], [0], [0], [1], [0, 0, 1, 1], [], []>, precision = #tpu.contract_precision<fp32>} : vector<4x8xf32>, vector<8x8xf32>, vector<4x8xf32> -> vector<4x8xf32>
    %10 = arith.addf %1, %9 : vector<4x8xf32>
    %cst_5 = arith.constant dense<0xFF800000> : vector<4xf32>
    %11 = vector.multi_reduction <maximumf>, %10, %cst_5 [1] : vector<4x8xf32> to vector<4xf32>
    %12 = vector.shape_cast %11 : vector<4xf32> to vector<4x1xf32>
    %13 = vector.broadcast %12 : vector<4x1xf32> to vector<4x8xf32>
    %14 = arith.subf %10, %13 : vector<4x8xf32>
    %15 = math.exp %14 : vector<4x8xf32>
    %cst_6 = arith.constant dense<0.000000e+00> : vector<4xf32>
    %16 = vector.multi_reduction <add>, %15, %cst_6 [1] : vector<4x8xf32> to vector<4xf32>
    %17 = vector.shape_cast %16 : vector<4xf32> to vector<4x1xf32>
    %18 = math.log %17 : vector<4x1xf32>
    %19 = arith.addf %12, %18 : vector<4x1xf32>
    %cst_7 = arith.constant 0.000000e+00 : f32
    %20 = vector.broadcast %cst_7 : f32 to vector<4x8xf32>
    %21 = arith.select %5, %10, %20 : vector<4x8xi1>, vector<4x8xf32>
    %cst_8 = arith.constant dense<0.000000e+00> : vector<4xf32>
    %22 = vector.multi_reduction <add>, %21, %cst_8 [1] : vector<4x8xf32> to vector<4xf32>
    %23 = vector.shape_cast %22 : vector<4xf32> to vector<4x1xf32>
    %24 = tpu.iota {dimensions = array<i32: 0>} : vector<4x1xi32>
    %25 = vector.broadcast %0 : i32 to vector<4x1xi32>
    %26 = arith.addi %25, %24 : vector<4x1xi32>
    %c4_i32_9 = arith.constant 4 : i32
    %27 = vector.broadcast %c4_i32_9 : i32 to vector<4x1xi32>
    %28 = arith.cmpi slt, %26, %27 : vector<4x1xi32>
    %29 = arith.subf %19, %23 : vector<4x1xf32>
    %cst_10 = arith.constant 0.000000e+00 : f32
    %30 = vector.broadcast %cst_10 : f32 to vector<4x1xf32>
    %31 = arith.select %28, %29, %30 : vector<4x1xi1>, vector<4x1xf32>
    %32 = vector.shape_cast %31 : vector<4x1xf32> to vector<1x4x1xf32>
    %cst_11 = arith.constant dense<0.000000e+00> : vector<1xf32>
    %33 = vector.multi_reduction <add>, %32, %cst_11 [1, 2] : vector<1x4x1xf32> to vector<1xf32>
    %34 = vector.shape_cast %33 : vector<1xf32> to vector<1x1x1xf32>
    %35 = vector.extract %34[0, 0, 0] : f32 from vector<1x1x1xf32>
    %36 = vector.broadcast %35 : f32 to vector<1x8x128xf32>
    %c0_12 = arith.constant 0 : index
    %c0_13 = arith.constant 0 : index
    %c0_14 = arith.constant 0 : index
    %37 = vector.load %arg4[%c0_12, %c0_13, %c0_14] : memref<1x8x128xf32, #tpu.memory_space<vmem>>, vector<1x8x128xf32>
    tpu.vector_store %arg4[%c0_12, %c0_13, %c0_14], %36 {strides = array<i32>} : memref<1x8x128xf32, #tpu.memory_space<vmem>>, vector<1x8x128xf32>,
    return
  }
  func.func @transform_0(%arg0: i32) -> (i32, i32) {
    %c0_i32 = arith.constant 0 : i32
    %c0_i32_0 = arith.constant 0 : i32
    return %arg0, %c0_i32 : i32, i32
  }
  func.func @transform_1(%arg0: i32) -> (i32, i32) {
    %c0_i32 = arith.constant 0 : i32
    %c0_i32_0 = arith.constant 0 : i32
    return %arg0, %c0_i32 : i32, i32
  }
  func.func @transform_2(%arg0: i32) -> (i32, i32) {
    %c0_i32 = arith.constant 0 : i32
    %c0_i32_0 = arith.constant 0 : i32
    %c0_i32_1 = arith.constant 0 : i32
    return %c0_i32, %c0_i32_0 : i32, i32
  }
  func.func @transform_3(%arg0: i32) -> (i32, i32, i32) {
    %c0_i32 = arith.constant 0 : i32
    %c0_i32_0 = arith.constant 0 : i32
    %c0_i32_1 = arith.constant 0 : i32
    return %arg0, %c0_i32, %c0_i32_0 : i32, i32, i32
  }
}

</mosaic_0001>

<bundles_post_ra>
// kernel: tpu_custom_call.1
= control target key start
LH: loop header
LB: loop body
LE: loop exit
PB: predicated region body
PF: predicated region fallthrough
CT: control target
= control target key end

     0   :  { %8 = vsyncpa [#allocation3], 0  ;;  %s693_s0 = inlined_call_operand.hbm [shape: f32[4,8], index: 0, kind: input, shape index: {}]   ;;  %s694_s1 = inlined_call_operand.vmem [shape: s32[4,1], index: 1, kind: input, shape index: {}]   ;;  %s695_s2 = inlined_call_operand.vmem [shape: f32[8,8], index: 2, kind: input, shape index: {}]   ;;  %s696_s3 = inlined_call_operand.hbm [shape: f32[1,8,128], index: 3, kind: output, shape index: {}]  }
   0x1   :  { %9 = vsyncpa [#allocation4], 0  ;;  %s644_s12 = smov [#allocation2]  }
   0x2   :  { %s16_s13 = sshll.u32 %s644_s12, 4  ;;  %s17_s13 = int_to_ptr.vmem [resolvable:$true] %s16_s13 }
   0x3   :  { %s608_s14 = scalar_lea.vmem %s17_s13, 64  ;;  %p613_p1 = scmp.lt.s32.totalorder %s17_s13, %s17_s13 }
   0x4   :  { %p609_p0 = scmp.ne.s32.totalorder %s17_s13, %s608_s14  ;;  %p614_p2 = scmp.lt.s32.totalorder %s608_s14, %s608_s14 }
   0x6   :  { %p615_p3 = por %p614_p2, %p613_p1 }
   0x8   :  { %p616_p4 = pnand %p615_p3, %p609_p0 }
   0xa   :  { %619 = shalt.err (!%p616_p4)
}
   0xb   :  { %19 = dma.hbm_to_vmem [thread:$0]  %s693_s0, 64, %s17_s13, [#allocation3]  }
   0xc   :  { %640 = dma.done.wait [#allocation3], 64  }
   0xd   :  { %641 = vsyncadd [#allocation3], 4294967232  ;;  %v645_v0 = vmov 0   ;;  %v646_v1 = vmov 0.0   ;;  %vm647_vm0 = vmmov 0   ;;  %v38_v3 = vld [vmem:[%s695_s2] sm:$0xff]  ;;  %v30_v9 = vlaneseq }
   0xe   :  { %595 = vset.pattern.permute.xlu0 %v645_v0  ;;  %563 = vmatprep.subr.mxu1 %v646_v1  ;;  %v29_v2 = vld [vmem:[%s694_s1] sm:$0xf]  ;;  %v74_v4 = vand.u32 4294901760, %v38_v3  ;;  %vm39_vm1 = vcmask 64512   ;;  %vm490_vm3 = vcmask 60416   ;;  %vm514_vm5 = vcmask 3072  }
   0xf   :  { %558 = vmatprep.subr.mxu0 %v646_v1  ;;  %565 = vmatprep.mubr.msk.f32.mxu1 %vm647_vm0, %v646_v1  ;;  %v31_v10 = vand.u32 127, %v30_v9  ;;  %v28_v33 = vld [vmem:[#allocation2] sm:$0xf]  ;;  %v508_v47 = vshrl.u32 %v30_v9, 7  ;;  %s648_s0 = smov [#allocation5]  }
  0x10   :  { %560 = vmatprep.mubr.msk.f32.mxu0 %vm647_vm0, %v646_v1  ;;  %33 = vperm.xlu0 %595, %v29_v2   ;;  %v151_v5 = vsub.f32 %v38_v3, %v74_v4  ;;  %s533_s1 = sshll.u32 %s648_s0, 4  ;;  %s534_s1 = int_to_ptr.vmem [resolvable:$true] %s533_s1 }
  0x11   :  { %559 = vmatpush3.msra.mxu0 %v74_v4  ;;  %vm511_vm4 = vcmp.lt.s32.totalorder %v508_v47, 4  ;;  %s620_s21 = scalar_lea.vmem %s534_s1, 128  ;;  %p625_p6 = scmp.lt.s32.totalorder %s534_s1, %s534_s1 }
  0x12   :  { %568 = vmatprep.subr.mxu0 %v646_v1  ;;  %v152_v6 = vand.u32 4294901760, %v151_v5  ;;  %p621_p5 = scmp.ne.s32.totalorder %s534_s1, %s620_s21  ;;  %p626_p7 = scmp.lt.s32.totalorder %s620_s21, %s620_s21 }
  0x14   :  { %v153_v7 = vsub.f32 %v151_v5, %v152_v6  ;;  %p627_p8 = por %p626_p7, %p625_p6 }
  0x16   :  { %v154_v8 = vand.u32 4294901760, %v153_v7  ;;  %p628_p9 = pnand %p627_p8, %p621_p5 }
  0x18   :  { %564 = vmatpush3.msra.mxu1 %v154_v8 }
  0x19   :  { %573 = vmatprep.subr.mxu1 %v646_v1 }
  0x8b   :  { %v34_v11 = vpop.permute.xlu0 %33 }
  0x8c   :  { %vm35_vm2 = vcmp.eq.s32.totalorder %v31_v10, %v34_v11 }
  0x8d   :  { %v542_v12 = vsel %vm35_vm2, 1.0, %v646_v1 }
  0x8e   :  { %v41_v13 = vsel %vm39_vm1, %v542_v12, 0  ;;  %566 = vmatmul.mubr.msk.f32.vlgmr.msra.gmra.mxu1 %vm39_vm1, %v542_v12 }
  0x8f   :  { %v110_v14 = vsub.f32 %v41_v13, %v41_v13  ;;  %574 = vmatpush3.msra.mxu1 %v74_v4  ;;  %575 = vmatprep.mubr.msk.f32.mxu1 %vm647_vm0, %v646_v1 }
  0x90   :  { %583 = vmatprep.subr.mxu1 %v646_v1 }
  0x91   :  { %v111_v15 = vand.u32 4294901760, %v110_v14 }
  0x93   :  { %576 = vmatmul.mubr.f32.vlgmr.msra.gmra.mxu1 %v111_v15  ;;  %v112_v16 = vsub.f32 %v110_v14, %v111_v15 }
  0x94   :  { %584 = vmatpush3.msra.mxu1 %v74_v4  ;;  %585 = vmatprep.mubr.msk.f32.mxu1 %vm647_vm0, %v646_v1 }
  0x95   :  { %v113_v17 = vand.u32 4294901760, %v112_v16 }
  0x97   :  { %561 = vmatmul.mubr.f32.vlgmr.msra.gmra.mxu0 %v113_v17  ;;  %586 = vmatmul.mubr.msk.f32.vlgmr.msra.gmra.mxu1 %vm39_vm1, %v542_v12 }
  0x98   :  { %569 = vmatpush3.msra.mxu0 %v151_v5  ;;  %570 = vmatprep.mubr.msk.f32.mxu0 %vm647_vm0, %v646_v1 }
  0x99   :  { %578 = vmatprep.subr.mxu0 %v646_v1 }
  0x9b   :  { %571 = vmatmul.mubr.f32.vlgmr.msra.gmra.mxu0 %v110_v14 }
  0x9c   :  { %579 = vmatpush3.msra.mxu0 %v152_v6  ;;  %580 = vmatprep.mubr.msk.f32.mxu0 %vm647_vm0, %v646_v1 }
  0x9f   :  { %581 = vmatmul.mubr.msk.f32.vlgmr.msra.gmra.mxu0 %vm39_vm1, %v542_v12 }
 0x14e   :  { %v191_v18 = vpop.f32.mrf.mxu1 }
 0x150   :  { %v567_v19 = vpop.f32.mrf.mxu1 }
 0x153   :  { %v339_v20 = vpop.f32.mrf.mxu1 }
 0x155   :  { %v577_v21 = vpop.f32.mrf.mxu1 }
 0x157   :  { %v115_v22 = vpop.f32.mrf.mxu0  ;;  %v485_v23 = vpop.f32.mrf.mxu1 }
 0x158   :  { %v192_v26 = vadd.f32 %v191_v18, %v115_v22 }
 0x159   :  { %v562_v24 = vpop.f32.mrf.mxu0  ;;  %v587_v25 = vpop.f32.mrf.mxu1 }
 0x15b   :  { %v265_v27 = vpop.f32.mrf.mxu0 }
 0x15c   :  { %v266_v28 = vadd.f32 %v265_v27, %v192_v26 }
 0x15d   :  { %v572_v29 = vpop.f32.mrf.mxu0 }
 0x15e   :  { %v340_v30 = vadd.f32 %v339_v20, %v266_v28 }
 0x15f   :  { %v413_v31 = vpop.f32.mrf.mxu0 }
 0x160   :  { %v414_v32 = vadd.f32 %v413_v31, %v340_v30 }
 0x161   :  { %v582_v34 = vpop.f32.mrf.mxu0 }
 0x162   :  { %v486_v35 = vadd.f32 %v485_v23, %v414_v32 }
 0x164   :  { %v489_v36 = vadd.f32 %v486_v35, %v28_v33 }
 0x166   :  { %v491_v37 = vsel %vm490_vm3, %v489_v36, -inf  ;;  %v503_v43 = vsel %vm35_vm2, %v489_v36, 0.0 }
 0x167   :  { %492 = vmax.xlane.f32.xlu0 %v491_v37  ;;  %v504_v44 = vsel %vm490_vm3, %v503_v43, 0.0 }
 0x1f0   :  { %v493_v38 = vpop.xlane.xlu0 %492 }
 0x1f1   :  { %v494_v39 = vsub.f32 %v489_v36, %v493_v38 }
 0x1f3   :  { %v495_v40 = vmul.f32 1.442695, %v494_v39 }
 0x1f5   :  { %596 = vpow2.f32 %v495_v40 }
 0x202   :  { %v597_v41 = vpop.eup %596 }
 0x203   :  { %v497_v42 = vsel %vm490_vm3, %v597_v41, 0.0 }
 0x204   :  { %498 = vadd.xlane.f32.xlu1 %v497_v42 }
 0x208   :  { %505 = vadd.xlane.f32.xlu1 %v504_v44 }
 0x28d   :  { %v499_v45 = vpop.xlane.xlu1 %498 }
 0x28e   :  { %598 = vlog2.f32 %v499_v45 }
 0x291   :  { %v506_v50 = vpop.xlane.xlu1 %505 }
 0x29b   :  { %v599_v46 = vpop.eup %598 }
 0x29c   :  { %v501_v48 = vmul.f32 0.6931472, %v599_v46 }
 0x29e   :  { %v502_v49 = vadd.f32 %v501_v48, %v493_v38 }
 0x2a0   :  { %v512_v51 = vsub.f32 %v502_v49, %v506_v50 }
 0x2a2   :  { %v513_v52 = vsel %vm511_vm4, %v512_v51, 0.0 }
 0x2a3   :  { %v515_v53 = vsel %vm514_vm5, %v513_v52, 0.0 }
 0x2a4   :  { %516 = vadd.xlane.f32.xlu1 %v515_v53 }
 0x32d   :  { %v517_v54 = vpop.xlane.xlu1 %516 }
 0x32e   :  { %v518_v55 = vrot.slane %v517_v54, 4 }
 0x330   :  { %v519_v56 = vadd.f32 %v518_v55, %v517_v54 }
 0x332   :  { %v520_v57 = vrot.slane %v519_v56, 2 }
 0x334   :  { %v521_v58 = vadd.f32 %v520_v57, %v519_v56 }
 0x336   :  { %v522_v59 = vrot.slane %v521_v58, 1 }
 0x338   :  { %v523_v60 = vadd.f32 %v522_v59, %v521_v58 }
 0x33a   :  { %588 = vpush %v523_v60 }
 0x36b   :  { %s589_s2 = spop %588 }
 0x36c   :  { %v525_v61 = vstv %s589_s2 }
 0x36d   :  { %526 = vst [vmem:[#allocation5] sm:$0xff] %v525_v61 }
 0x36e   :  { %631 = shalt.err (!%p628_p9)
}
 0x36f   :  { %536 = dma.vmem_to_hbm [thread:$0]  %s534_s1, 128, %s696_s3, [#allocation4]  }
 0x370   :  { %642 = dma.done.wait [#allocation4], 128  }
 0x371   :  { %643 = vsyncadd [#allocation4], 4294967168 }
 0x372   :  { %540 = vsyncpa [#allocation3], 1 }
 0x373   :  { %541 = vsyncpa [#allocation4], 1 }

</bundles_post_ra>
